<compile_context>
chip_gen: v5e
topology: v5e:2x2
jax: 0.10.0
libtpu: 0.0.40
codegen_flags: <defaults>
</compile_context>

<pallas_src>
import math

import jax
import jax.numpy as jnp
from jax.experimental import pallas as pl
from jax.experimental.pallas import tpu as pltpu


_LANE = 128                          # vreg lane width
_MAX_LANE = 8192                     # widest last dim we bother with
_MIN_SPLIT_BYTES = 1 * 1024 * 1024   # below this, a forced 2-block split isn't worth it


def _vmem_budget():
    """Per-generation (block bytes, scoped-VMEM limit) with a guarded HW query."""
    cap = None
    try:
        cap = getattr(pltpu.get_tpu_info(), "vmem_capacity_bytes", None)
    except Exception:
        cap = None
    if cap is not None and cap >= 100 * 1024 * 1024:      # v5e / v6e: 128 MiB VMEM
        return 8 * 1024 * 1024, 64 * 1024 * 1024          # 8 MiB blocks, 64 MiB scoped
    # v7x (64 MiB VMEM) or unknown chip: stay at 4 MiB blocks and a tight
    # scoped limit (in+out double-buffered = 16 MiB resident + headroom).
    return 4 * 1024 * 1024, 24 * 1024 * 1024


_TARGET_TILE_BYTES, _VMEM_LIMIT_BYTES = _vmem_budget()


def _min_sublane(dtype) -> int:
    """Minimum sublane tile for packed layouts: f32->8, bf16->16, int8/fp8->32."""
    itemsize = jnp.dtype(dtype).itemsize
    return max(8, 8 * (4 // max(1, itemsize)))


def _copy_kernel(x_ref, o_ref):
    # Pass-through: GeneratorBase.forward defines no computation.
    o_ref[...] = x_ref[...]


def _compiler_params():
    return pltpu.CompilerParams(
        dimension_semantics=("parallel",),   # shards the row axis across v7x's 2 TCs
        vmem_limit_bytes=_VMEM_LIMIT_BYTES,
    )


def _choose_tile_rows(rows: int, lane: int, itemsize: int, sub: int) -> int:
    """Row tile: multiple of `sub` (or full extent), ~_TARGET_TILE_BYTES,
    preferring an exact divisor of `rows` (no ragged last block) and >= 2
    blocks for mid-size inputs so both v7x TensorCores get work."""
    total_bytes = rows * lane * itemsize
    target_rows = max(sub, (_TARGET_TILE_BYTES // (lane * itemsize)) // sub * sub)
    if rows <= sub or (rows <= target_rows and total_bytes < _MIN_SPLIT_BYTES):
        return rows                                   # single full-extent block
    if rows <= target_rows:
        # Mid-size: split into (at least) two blocks so the "parallel" row
        # axis can shard across both TensorCores on v7x.
        half = ((rows + 1) // 2 + sub - 1) // sub * sub
        return min(half, rows)
    # Large: largest tile <= target that divides rows exactly (full-size DMAs).
    max_rows = (rows // sub) * sub
    t = min(target_rows, max_rows)
    for cand in range(t, sub - 1, -sub):
        if rows % cand == 0:
            return cand
    return t                                          # ragged tail unavoidable


def _tiled_copy_2d(x2d: jax.Array, *, alias_input: bool) -> jax.Array:
    rows, lane = x2d.shape
    itemsize = jnp.dtype(x2d.dtype).itemsize
    tile_rows = _choose_tile_rows(rows, lane, itemsize, _min_sublane(x2d.dtype))
    grid = (pl.cdiv(rows, tile_rows),)
    return pl.pallas_call(
        _copy_kernel,
        out_shape=jax.ShapeDtypeStruct((rows, lane), x2d.dtype),
        grid_spec=pltpu.PrefetchScalarGridSpec(
            num_scalar_prefetch=0,
            grid=grid,
            in_specs=[pl.BlockSpec((tile_rows, lane), lambda i: (i, 0))],
            out_specs=pl.BlockSpec((tile_rows, lane), lambda i: (i, 0)),
        ),
        input_output_aliases={0: 0} if alias_input else {},
        compiler_params=_compiler_params(),
        cost_estimate=pl.CostEstimate(
            flops=0, transcendentals=0,
            bytes_accessed=2 * rows * lane * itemsize),
    )(x2d)


def _tiled_copy_1d(x1d: jax.Array, *, alias_input: bool) -> jax.Array:
    """Ragged fallback: 1-D blocked copy, partial final block masked by Pallas."""
    (n,) = x1d.shape
    itemsize = jnp.dtype(x1d.dtype).itemsize
    unit = _min_sublane(x1d.dtype) * _LANE            # one packed (sub, 128) tile
    target = max(unit, (_TARGET_TILE_BYTES // itemsize) // unit * unit)
    block = n if n <= target else target              # full-extent block always legal
    grid = (pl.cdiv(n, block),)
    return pl.pallas_call(
        _copy_kernel,
        out_shape=jax.ShapeDtypeStruct((n,), x1d.dtype),
        grid_spec=pltpu.PrefetchScalarGridSpec(
            num_scalar_prefetch=0,
            grid=grid,
            in_specs=[pl.BlockSpec((block,), lambda i: (i,))],
            out_specs=pl.BlockSpec((block,), lambda i: (i,)),
        ),
        input_output_aliases={0: 0} if alias_input else {},
        compiler_params=_compiler_params(),
        cost_estimate=pl.CostEstimate(
            flops=0, transcendentals=0, bytes_accessed=2 * n * itemsize),
    )(x1d)


def _materialized_copy(x: jax.Array, *, alias_input: bool = False) -> jax.Array:
    orig_shape = x.shape
    total = math.prod(orig_shape) if orig_shape else 1
    if total == 0:
        return x
    if total % _LANE == 0:
        # Fast path: lane-dense 2-D slab via a free (bitcast) reshape under
        # jit -- no pad, no trailing slice, zero extra HBM passes.
        lane = _LANE
        while lane * 2 <= _MAX_LANE and total % (lane * 2) == 0:
            lane *= 2
        out2d = _tiled_copy_2d(x.reshape(total // lane, lane),
                               alias_input=alias_input)
        return out2d.reshape(orig_shape)
    # Ragged sizes: 1-D blocked copy over the flat view (free reshape); same
    # HBM traffic as the aligned path (no pad / no slice).
    out1d = _tiled_copy_1d(x.reshape(total), alias_input=alias_input)
    return out1d.reshape(orig_shape)


# jit so the reshapes around the pallas_call are bitcasts (no HBM copies).
_materialized_copy = jax.jit(_materialized_copy, static_argnames=("alias_input",))


def generator_base_forward(x: jax.Array, *, materialize_copy: bool = False,
                           alias_input: bool = False) -> jax.Array:
    """Pallas implementation of GeneratorBase.forward: identity pass-through.

    By default no kernel is launched and `x` is returned as-is (the only way
    to beat the 2N-byte HBM roofline of an identity is to not copy).  Set
    materialize_copy=True to get a distinct buffer produced by the tiled
    Pallas copy kernel.  alias_input=True only helps if the caller donates
    x's buffer; otherwise XLA inserts a defensive copy and aliasing doubles
    traffic instead of helping.
    """
    if not materialize_copy:
        return x
    return _materialized_copy(x, alias_input=alias_input)


# TODO(synk): GeneratorBase.forward is abstract (returns NotImplementedError);
# save()/load() are torch state_dict I/O and __str__ is abstract — none have a
# Pallas equivalent beyond this identity pass-through.


if __name__ == "__main__":
    key = jax.random.PRNGKey(0)
    # Small NCHW input consistent with a GAN generator-style module.
    x = jax.random.normal(key, (2, 4, 16, 16), dtype=jnp.float32)

    # Default path: true identity, no kernel launched (top perf-review item).
    y_id = generator_base_forward(x)
    jax.block_until_ready(y_id)
    assert y_id.shape == x.shape and y_id.dtype == x.dtype
    assert bool(jnp.all(y_id == x))

    # Explicitly materialized copy: exercises the tiled Pallas kernel.
    y_copy = generator_base_forward(x, materialize_copy=True)
    jax.block_until_ready(y_copy)
    assert y_copy.shape == x.shape and y_copy.dtype == x.dtype
    assert bool(jnp.all(y_copy == x))

    print("KERNEL_OK")
</pallas_src>

<mosaic_0001>
module attributes {stable_mosaic.version = 11 : i64} {
  func.func @_copy_kernel(%arg0: i32, %arg1: memref<1x2048xf32, #tpu.memory_space<vmem>>, %arg2: memref<1x2048xf32, #tpu.memory_space<vmem>>) attributes {dimension_semantics = [#tpu.dimension_semantics<parallel>], iteration_bounds = array<i64: 1>, scalar_prefetch = 0 : i64, scratch_operands = 0 : i64, tpu.core_type = #tpu.core_type<tc>, window_params = [{transform_indices = @transform_0, window_bounds = array<i64: 1, 2048>}, {transform_indices = @transform_1, window_bounds = array<i64: 1, 2048>}]} {
    %c0 = arith.constant 0 : index
    %c0_0 = arith.constant 0 : index
    %0 = vector.load %arg1[%c0, %c0_0] : memref<1x2048xf32, #tpu.memory_space<vmem>>, vector<1x2048xf32>
    %c0_1 = arith.constant 0 : index
    %c0_2 = arith.constant 0 : index
    %1 = vector.load %arg2[%c0_1, %c0_2] : memref<1x2048xf32, #tpu.memory_space<vmem>>, vector<1x2048xf32>
    tpu.vector_store %arg2[%c0_1, %c0_2], %0 {strides = array<i32>} : memref<1x2048xf32, #tpu.memory_space<vmem>>, vector<1x2048xf32>,
    return
  }
  func.func @transform_0(%arg0: i32) -> (i32, i32) {
    %c0_i32 = arith.constant 0 : i32
    %c0_i32_0 = arith.constant 0 : i32
    return %arg0, %c0_i32 : i32, i32
  }
  func.func @transform_1(%arg0: i32) -> (i32, i32) {
    %c0_i32 = arith.constant 0 : i32
    %c0_i32_0 = arith.constant 0 : i32
    return %arg0, %c0_i32 : i32, i32
  }
}

</mosaic_0001>

<bundles_post_ra>
// kernel: _materialized_copy.1
= control target key start
LH: loop header
LB: loop body
LE: loop exit
PB: predicated region body
PF: predicated region fallthrough
CT: control target
= control target key end

     0   :  { %s38_s0 = inlined_call_operand.vmem [shape: f32[1,2048], index: 0, kind: input, shape index: {}]   ;;  %s39_s1 = inlined_call_operand.vmem [shape: f32[1,2048], index: 1, kind: output, shape index: {}]  }
   0x1   :  { %v8_v0 = vld [vmem:[%s38_s0] sm:$0xff]  ;;  %v9_v1 = vld [vmem:[%s38_s0 + $0x8] sm:$0xff] }
   0x2   :  { %10 = vst [vmem:[%s39_s1] sm:$0xff] %v8_v0 }
   0x3   :  { %11 = vst [vmem:[%s39_s1 + $0x8] sm:$0xff] %v9_v1 }

</bundles_post_ra>
